<compile_context>
chip_gen: v7x
topology: tpu7x:2x2x1
jax: 0.10.0
libtpu: 0.0.40
codegen_flags: <defaults>
</compile_context>

<pallas_src>
import functools

import jax
import jax.numpy as jnp
from jax.experimental import pallas as pl
from jax.experimental.pallas import tpu as pltpu

C_IN = 10
C_OUT = 20
K = 3
BN_EPS = 1e-5


def bn_conv1d_kernel(x_ref, gamma_ref, beta_ref, wt_ref, o_ref, *, n, l):
    # x_ref:     (C_IN, n*l)       channels on sublanes, flattened (N, L) on lanes
    # gamma_ref: (C_IN, 1)         BN weight
    # beta_ref:  (C_IN, 1)         BN bias
    # wt_ref:    (K*C_IN, C_OUT)   row r = k*C_IN + c holds conv weight w[o, c, k]
    # o_ref:     (C_OUT, n*l_out)  lane-dense output slab
    l_out = l - K + 1
    x = x_ref[...]  # already f32; no redundant casts

    # ---- BatchNorm1d training-mode batch stats (biased variance, eps inside rsqrt) ----
    mean = jnp.mean(x, axis=1, keepdims=True)                  # (C_IN, 1)
    diff = x - mean
    var = jnp.mean(diff * diff, axis=1, keepdims=True)         # (C_IN, 1)
    s = gamma_ref[...] * jax.lax.rsqrt(var + BN_EPS)           # per-channel scale (EUP)
    b = beta_ref[...] - mean * s                               # per-channel shift

    # ---- Fold the BN affine into the conv weight / bias (weight-side work only) ----
    wt = wt_ref[...]                                           # (K*C_IN, C_OUT)
    s_rows = jnp.concatenate([s] * K, axis=0)                  # (K*C_IN, 1), row-aligned
    b_rows = jnp.concatenate([b] * K, axis=0)                  # (K*C_IN, 1)
    wt_scaled = wt * s_rows                                    # w'[r, o] = w[r, o] * s[c(r)]
    bias_row = jnp.sum(wt * b_rows, axis=0, keepdims=True)     # (1, C_OUT)

    # ---- im2col on the *raw* x: xcol[k*C_IN + c, i*l_out + j] = x[c, i*l + j + k] ----
    xcol = jnp.concatenate(
        [jnp.concatenate(
            [x[:, i * l + k: i * l + k + l_out] for i in range(n)], axis=1)
         for k in range(K)],
        axis=0)                                                # (K*C_IN, n*l_out)

    # Augment with a ones-row so the folded bias is produced by the same MXU matmul.
    ones_row = jnp.ones((1, n * l_out), jnp.float32)
    xcol_aug = jnp.concatenate([xcol, ones_row], axis=0)       # (K*C_IN+1, n*l_out)
    wt_aug = jnp.concatenate([wt_scaled, bias_row], axis=0)    # (K*C_IN+1, C_OUT)

    # ---- Single MXU matmul: out[o, :] = sum_r wt_aug[r, o] * xcol_aug[r, :] ----
    out = jax.lax.dot_general(
        wt_aug, xcol_aug,
        dimension_numbers=(((0,), (0,)), ((), ())),
        preferred_element_type=jnp.float32)                    # (C_OUT, n*l_out)
    o_ref[...] = out.astype(o_ref.dtype)


def bn_before_conv1d(x, gamma, beta, w):
    n, c, l = x.shape
    assert c == C_IN and w.shape == (C_OUT, C_IN, K)
    assert l >= K, "Conv1d(kernel_size=3, padding=0, stride=1) requires L >= 3"
    l_out = l - K + 1

    # Layout plumbing outside the kernel (free for the kernel): lane-dense activations,
    # k-major-row weight slab, column-shaped BN params.
    x2d = jnp.reshape(jnp.transpose(x, (1, 0, 2)), (C_IN, n * l))      # (C_IN, N*L)
    wt = jnp.reshape(jnp.transpose(w, (2, 1, 0)), (K * C_IN, C_OUT))   # (K*C_IN, C_OUT)
    gamma_col = gamma.reshape(C_IN, 1)
    beta_col = beta.reshape(C_IN, 1)

    kernel = functools.partial(bn_conv1d_kernel, n=n, l=l)
    flops = 2 * C_OUT * (K * C_IN + 1) * n * l_out + 6 * C_IN * n * l
    bytes_accessed = 4 * (x2d.size + wt.size + gamma_col.size + beta_col.size
                          + C_OUT * n * l_out)

    out2d = pl.pallas_call(
        kernel,
        out_shape=jax.ShapeDtypeStruct((C_OUT, n * l_out), x.dtype),
        in_specs=[pl.BlockSpec(memory_space=pltpu.MemorySpace.VMEM)] * 4,
        out_specs=pl.BlockSpec(memory_space=pltpu.MemorySpace.VMEM),
        cost_estimate=pl.CostEstimate(
            flops=flops, transcendentals=C_IN, bytes_accessed=bytes_accessed),
    )(x2d, gamma_col, beta_col, wt)

    # (C_OUT, N*L_out) -> (N, C_OUT, L_out)
    return jnp.transpose(out2d.reshape(C_OUT, n, l_out), (1, 0, 2))


def _reference(x, gamma, beta, w):
    # Pure-JAX reference mirroring PyTorch semantics (training-mode BN + Conv1d, no bias).
    mean = jnp.mean(x, axis=(0, 2), keepdims=True)
    var = jnp.mean((x - mean) ** 2, axis=(0, 2), keepdims=True)
    xn = (x - mean) / jnp.sqrt(var + BN_EPS) * gamma.reshape(1, -1, 1) + beta.reshape(1, -1, 1)
    return jax.lax.conv_general_dilated(
        xn, w, window_strides=(1,), padding="VALID",
        dimension_numbers=("NCH", "OIH", "NCH"),
    )


if __name__ == "__main__":
    key = jax.random.PRNGKey(0)
    kx, kw, kg, kb = jax.random.split(key, 4)

    N, L = 2, 16
    x = jax.random.normal(kx, (N, C_IN, L), dtype=jnp.float32)
    # Deterministic parameter init (shapes from the module __init__):
    # BN: weight (10,), bias (10,); Conv1d: weight (20, 10, 3), bias=False.
    gamma = 1.0 + 0.1 * jax.random.normal(kg, (C_IN,), dtype=jnp.float32)
    beta = 0.1 * jax.random.normal(kb, (C_IN,), dtype=jnp.float32)
    w = 0.1 * jax.random.normal(kw, (C_OUT, C_IN, K), dtype=jnp.float32)

    out = bn_before_conv1d(x, gamma, beta, w)
    out = jax.block_until_ready(out)

    ref = _reference(x, gamma, beta, w)
    assert out.shape == (N, C_OUT, L - K + 1), out.shape
    assert bool(jnp.allclose(out, ref, atol=1e-4, rtol=1e-4)), "mismatch vs reference"
    print("KERNEL_OK")
</pallas_src>

<mosaic_0001>
module attributes {stable_mosaic.version = 11 : i64} {
  func.func @bn_conv1d_kernel(%arg0: memref<10x32xf32, #tpu.memory_space<vmem>>, %arg1: memref<10x1xf32, #tpu.memory_space<vmem>>, %arg2: memref<10x1xf32, #tpu.memory_space<vmem>>, %arg3: memref<30x20xf32, #tpu.memory_space<vmem>>, %arg4: memref<20x28xf32, #tpu.memory_space<vmem>>) attributes {dimension_semantics = [], scalar_prefetch = 0 : i64, scratch_operands = 0 : i64, tpu.core_type = #tpu.core_type<tc>} {
    %c0 = arith.constant 0 : index
    %c0_0 = arith.constant 0 : index
    %0 = vector.load %arg0[%c0, %c0_0] : memref<10x32xf32, #tpu.memory_space<vmem>>, vector<10x32xf32>
    %cst = arith.constant dense<0.000000e+00> : vector<10xf32>
    %1 = vector.multi_reduction <add>, %0, %cst [1] : vector<10x32xf32> to vector<10xf32>
    %2 = vector.shape_cast %1 : vector<10xf32> to vector<10x1xf32>
    %cst_1 = arith.constant 3.200000e+01 : f32
    %3 = vector.broadcast %cst_1 : f32 to vector<10x1xf32>
    %4 = arith.divf %2, %3 : vector<10x1xf32>
    %5 = vector.broadcast %4 : vector<10x1xf32> to vector<10x32xf32>
    %6 = arith.subf %0, %5 : vector<10x32xf32>
    %7 = arith.mulf %6, %6 : vector<10x32xf32>
    %cst_2 = arith.constant dense<0.000000e+00> : vector<10xf32>
    %8 = vector.multi_reduction <add>, %7, %cst_2 [1] : vector<10x32xf32> to vector<10xf32>
    %9 = vector.shape_cast %8 : vector<10xf32> to vector<10x1xf32>
    %cst_3 = arith.constant 3.200000e+01 : f32
    %10 = vector.broadcast %cst_3 : f32 to vector<10x1xf32>
    %11 = arith.divf %9, %10 : vector<10x1xf32>
    %c0_4 = arith.constant 0 : index
    %c0_5 = arith.constant 0 : index
    %12 = vector.load %arg1[%c0_4, %c0_5] : memref<10x1xf32, #tpu.memory_space<vmem>>, vector<10x1xf32>
    %cst_6 = arith.constant 9.99999974E-6 : f32
    %13 = vector.broadcast %cst_6 : f32 to vector<10x1xf32>
    %14 = arith.addf %11, %13 : vector<10x1xf32>
    %15 = math.rsqrt %14 : vector<10x1xf32>
    %16 = arith.mulf %12, %15 : vector<10x1xf32>
    %c0_7 = arith.constant 0 : index
    %c0_8 = arith.constant 0 : index
    %17 = vector.load %arg2[%c0_7, %c0_8] : memref<10x1xf32, #tpu.memory_space<vmem>>, vector<10x1xf32>
    %18 = arith.mulf %4, %16 : vector<10x1xf32>
    %19 = arith.subf %17, %18 : vector<10x1xf32>
    %c0_9 = arith.constant 0 : index
    %c0_10 = arith.constant 0 : index
    %20 = vector.load %arg3[%c0_9, %c0_10] : memref<30x20xf32, #tpu.memory_space<vmem>>, vector<30x20xf32>
    %21 = tpu.concatenate %16, %16, %16 in 0 : vector<10x1xf32>, vector<10x1xf32>, vector<10x1xf32> -> vector<30x1xf32>
    %22 = tpu.concatenate %19, %19, %19 in 0 : vector<10x1xf32>, vector<10x1xf32>, vector<10x1xf32> -> vector<30x1xf32>
    %23 = vector.broadcast %21 : vector<30x1xf32> to vector<30x20xf32>
    %24 = arith.mulf %20, %23 : vector<30x20xf32>
    %25 = vector.broadcast %22 : vector<30x1xf32> to vector<30x20xf32>
    %26 = arith.mulf %20, %25 : vector<30x20xf32>
    %cst_11 = arith.constant dense<0.000000e+00> : vector<20xf32>
    %27 = vector.multi_reduction <add>, %26, %cst_11 [0] : vector<30x20xf32> to vector<20xf32>
    %28 = vector.shape_cast %27 : vector<20xf32> to vector<1x20xf32>
    %29 = vector.extract_strided_slice %0 {offsets = [0, 0], sizes = [10, 14], strides = [1, 1]} : vector<10x32xf32> to vector<10x14xf32>
    %30 = vector.extract_strided_slice %0 {offsets = [0, 16], sizes = [10, 14], strides = [1, 1]} : vector<10x32xf32> to vector<10x14xf32>
    %31 = tpu.concatenate %29, %30 in 1 : vector<10x14xf32>, vector<10x14xf32> -> vector<10x28xf32>
    %32 = vector.extract_strided_slice %0 {offsets = [0, 1], sizes = [10, 14], strides = [1, 1]} : vector<10x32xf32> to vector<10x14xf32>
    %33 = vector.extract_strided_slice %0 {offsets = [0, 17], sizes = [10, 14], strides = [1, 1]} : vector<10x32xf32> to vector<10x14xf32>
    %34 = tpu.concatenate %32, %33 in 1 : vector<10x14xf32>, vector<10x14xf32> -> vector<10x28xf32>
    %35 = vector.extract_strided_slice %0 {offsets = [0, 2], sizes = [10, 14], strides = [1, 1]} : vector<10x32xf32> to vector<10x14xf32>
    %36 = vector.extract_strided_slice %0 {offsets = [0, 18], sizes = [10, 14], strides = [1, 1]} : vector<10x32xf32> to vector<10x14xf32>
    %37 = tpu.concatenate %35, %36 in 1 : vector<10x14xf32>, vector<10x14xf32> -> vector<10x28xf32>
    %38 = tpu.concatenate %31, %34, %37 in 0 : vector<10x28xf32>, vector<10x28xf32>, vector<10x28xf32> -> vector<30x28xf32>
    %cst_12 = arith.constant 1.000000e+00 : f32
    %39 = vector.broadcast %cst_12 : f32 to vector<1x28xf32>
    %40 = tpu.concatenate %38, %39 in 0 : vector<30x28xf32>, vector<1x28xf32> -> vector<31x28xf32>
    %41 = tpu.concatenate %24, %28 in 0 : vector<30x20xf32>, vector<1x20xf32> -> vector<31x20xf32>
    %cst_13 = arith.constant dense<0.000000e+00> : vector<20x28xf32>
    %42 = tpu.matmul %41, %40, %cst_13 {dimension_numbers = #tpu.dot_dimension_numbers<[0], [0], [1], [1], [0, 1, 1, 1], [], []>} : vector<31x20xf32>, vector<31x28xf32>, vector<20x28xf32> -> vector<20x28xf32>
    %c0_14 = arith.constant 0 : index
    %c0_15 = arith.constant 0 : index
    %43 = vector.load %arg4[%c0_14, %c0_15] : memref<20x28xf32, #tpu.memory_space<vmem>>, vector<20x28xf32>
    tpu.vector_store %arg4[%c0_14, %c0_15], %42 {strides = array<i32>} : memref<20x28xf32, #tpu.memory_space<vmem>>, vector<20x28xf32>,
    return
  }
}

</mosaic_0001>

<bundles_post_ra>
// kernel: tpu_custom_call.1
= control target key start
LH: loop header
LB: loop body
LE: loop exit
PB: predicated region body
PF: predicated region fallthrough
CT: control target
= control target key end

     0   :  { %vm20_vm0 = vcmask 261120   ;;  %vm24_vm1 = vcmask 254976   ;;  %s573_s0 = inlined_call_operand.vmem [shape: f32[10,32], index: 0, kind: input, shape index: {}]   ;;  %s574_s1 = inlined_call_operand.vmem [shape: f32[10,1], index: 1, kind: input, shape index: {}]   ;;  %s575_s2 = inlined_call_operand.vmem [shape: f32[10,1], index: 2, kind: input, shape index: {}]   ;;  %s576_s3 = inlined_call_operand.vmem [shape: f32[30,20], index: 3, kind: input, shape index: {}]   ;;  %s577_s4 = inlined_call_operand.hbm [shape: f32[20,28], index: 4, kind: output, shape index: {}]  }
   0x1   :  { %v488_v0 = vld [vmem:[%s573_s0] sm:$0xff]  ;;  %v493_v1 = vld [vmem:[%s573_s0 + $0x8] sm:$0x3] }
   0x2   :  { %v21_v2 = vsel %vm20_vm0, %v488_v0, 0.0 }
   0x3   :  { %9 = vsyncpa [#allocation3], 0  ;;  %22 = vadd.xlane.f32.xlu0 %v21_v2  ;;  %v25_v3 = vsel %vm24_vm1, %v493_v1, 0.0  ;;  %v448_v14 = vmov 0   ;;  %v43_v21 = vld [vmem:[%s574_s1] sm:$0xff]  ;;  %v405_v32 = vpack.i.bf16 %v493_v1, %v488_v0  ;;  %vm63_vm2 = vcmask 1041408  }
   0x4   :  { %398 = vset.pattern.permute.xlu0 %v448_v14  ;;  %399 = vset.pattern.permute.xlu1 %v448_v14  ;;  %v44_v24 = vld [vmem:[%s574_s1 + $0x8] sm:$0x3]  ;;  %v51_v25 = vld [vmem:[%s575_s2] sm:$0xff]  ;;  %s449_s1 = smov 125   ;;  %vm69_vm3 = vcmask 1043456   ;;  %s451_s26 = smov 127   ;;  %v410_v50 = vpack.i.bf16 %v488_v0, %v493_v1 }
   0x5   :  { %v52_v30 = vld [vmem:[%s575_s2 + $0x8] sm:$0x3]  ;;  %s450_s2 = smov 124   ;;  %s452_s27 = smov 126   ;;  %v453_v51 = vmov 0.0|0.0   ;;  %vm454_vm4 = vmmov 0  }
   0x6   :  { %375 = vmatprep.subr.bf16.mxu0 %v453_v51  ;;  %382 = vmatprep.subr.bf16.mxu1 %v453_v51  ;;  %v455_v52 = vmov 0.0   ;;  %v58_v53 = vld [vmem:[%s576_s3 + $0x8] sm:$0xff]  ;;  %v57_v54 = vld [vmem:[%s576_s3] sm:$0xff]  ;;  %v59_v58 = vld [vmem:[%s576_s3 + $0x10] sm:$0xff]  ;;  %vm133_vm5 = vcmask 162816   ;;  %vm139_vm6 = vcmask 160768  }
   0x7   :  { %26 = vadd.xlane.f32.xlu0 %v25_v3  ;;  %366 = vmatprep.mubr.msk.f32.mxu0 %vm454_vm4, %v455_v52  ;;  %v60_v63 = vld [vmem:[%s576_s3 + $0x18] sm:$0x3f]  ;;  %vm197_vm7 = vcmask 1045504   ;;  %vm156_vm8 = vcmask 113664   ;;  %vm242_vm9 = vcmask 1046528   ;;  %vm456_vm10 = vmmov 1  }
   0x8   :  { %369 = vmatprep.mubr.msk.f32.mxu1 %vm454_vm4, %v455_v52  ;;  %vm380_vm11 = vmpackc.low %vm242_vm9, %vm456_vm10  ;;  %vm232_vm12 = vcmask 252928   ;;  %vm326_vm13 = vcmask 228352   ;;  %s457_s3 = smov [#allocation2]   ;;  %vm329_vm14 = vcmask 224256  }
   0x9   :  { %s336_s10 = sshll.u32 %s457_s3, 4  ;;  %s337_s10 = int_to_ptr.vmem [resolvable:$true] %s336_s10 }
   0xa   :  { %s424_s11 = scalar_lea.vmem %s337_s10, 384  ;;  %p429_p1 = scmp.lt.s32.totalorder %s337_s10, %s337_s10 }
   0xb   :  { %p425_p0 = scmp.ne.s32.totalorder %s337_s10, %s424_s11  ;;  %p430_p2 = scmp.lt.s32.totalorder %s424_s11, %s424_s11 }
   0xd   :  { %p431_p3 = por %p430_p2, %p429_p1 }
   0xf   :  { %p432_p4 = pnand %p431_p3, %p425_p0 }
  0x90   :  { %v23_v4 = vpop.xlane.xlu0 %22 }
  0x91   :  { %v29_v5 = vmul.f32 0.03125, %v23_v4 }
  0x93   :  { %v31_v6 = vsub.f32 %v488_v0, %v29_v5 }
  0x94   :  { %v27_v7 = vpop.xlane.xlu0 %26 }
  0x95   :  { %v30_v8 = vmul.f32 0.03125, %v27_v7  ;;  %v33_v9 = vmul.f32 %v31_v6, %v31_v6 }
  0x97   :  { %v32_v10 = vsub.f32 %v493_v1, %v30_v8  ;;  %v35_v11 = vsel %vm20_vm0, %v33_v9, 0.0 }
  0x98   :  { %36 = vadd.xlane.f32.xlu1 %v35_v11 }
  0x99   :  { %v34_v12 = vmul.f32 %v32_v10, %v32_v10 }
  0x9b   :  { %v38_v13 = vsel %vm24_vm1, %v34_v12, 0.0 }
  0x9c   :  { %39 = vadd.xlane.f32.xlu1 %v38_v13 }
 0x125   :  { %v37_v15 = vpop.xlane.xlu1 %36 }
 0x126   :  { %v41_v16 = vmul.f32 0.03125, %v37_v15 }
 0x128   :  { %v45_v17 = vadd.f32 1e-05, %v41_v16 }
 0x129   :  { %v40_v18 = vpop.xlane.xlu1 %39 }
 0x12a   :  { %420 = vrsqrt.f32 %v45_v17  ;;  %v42_v19 = vmul.f32 0.03125, %v40_v18 }
 0x12c   :  { %v46_v20 = vadd.f32 1e-05, %v42_v19 }
 0x12e   :  { %422 = vrsqrt.f32 %v46_v20 }
 0x134   :  { %v421_v22 = vpop.eup %420 }
 0x135   :  { %v49_v23 = vmul.f32 %v421_v22, %v43_v21 }
 0x137   :  { %v53_v26 = vmul.f32 %v49_v23, %v29_v5  ;;  %v64_v43 = vrot.slane %v49_v23, 6  ;;  %v70_v46 = vrot.slane %v49_v23, 4 }
 0x138   :  { %v423_v27 = vpop.eup %422 }
 0x139   :  { %v50_v28 = vmul.f32 %v423_v27, %v44_v24  ;;  %v55_v29 = vsub.f32 %v51_v25, %v53_v26 }
 0x13b   :  { %112 = vperm.xlu0 %398, %v55_v29   ;;  %v54_v31 = vmul.f32 %v50_v28, %v30_v8  ;;  %v78_v34 = vrot.slane %v55_v29, 6  ;;  %v83_v37 = vrot.slane %v55_v29, 4  ;;  %v65_v42 = vrot.slane %v50_v28, 6 }
 0x13c   :  { %v74_v44 = vsel %vm63_vm2, %v50_v28, %v64_v43  ;;  %v71_v48 = vrot.slane %v50_v28, 4 }
 0x13d   :  { %v56_v33 = vsub.f32 %v52_v30, %v54_v31  ;;  %v66_v45 = vsel %vm63_vm2, %v64_v43, %v65_v42 }
 0x13e   :  { %v75_v47 = vsel %vm69_vm3, %v66_v45, %v70_v46  ;;  %v72_v49 = vsel %vm69_vm3, %v70_v46, %v71_v48 }
 0x13f   :  { %v87_v35 = vsel %vm63_vm2, %v56_v33, %v78_v34  ;;  %v79_v36 = vrot.slane %v56_v33, 6  ;;  %406 = vrot.lane.b32.xlu0 %v405_v32, %s449_s1  ;;  %v84_v40 = vrot.slane %v56_v33, 4 }
 0x140   :  { %117 = vperm.xlu1 %399, %v87_v35  }
 0x141   :  { %v80_v38 = vsel %vm63_vm2, %v78_v34, %v79_v36  ;;  %v85_v41 = vsel %vm69_vm3, %v83_v37, %v84_v40 }
 0x142   :  { %v88_v39 = vsel %vm69_vm3, %v80_v38, %v83_v37 }
 0x143   :  { %416 = vrot.lane.b32.xlu0 %v405_v32, %s450_s2 }
 0x144   :  { %122 = vperm.xlu1 %399, %v88_v39  }
 0x148   :  { %126 = vperm.xlu1 %399, %v85_v41  }
 0x14c   :  { %90 = vperm.xlu1 %399, %v49_v23  }
 0x150   :  { %95 = vperm.xlu1 %399, %v74_v44  }
 0x154   :  { %100 = vperm.xlu1 %399, %v75_v47  }
 0x158   :  { %104 = vperm.xlu1 %399, %v72_v49  }
 0x15c   :  { %401 = vrot.lane.b32.xlu1 %v405_v32, %s451_s26 }
 0x160   :  { %411 = vrot.lane.b32.xlu1 %v410_v50, %s452_s27 }
 0x1ba   :  { %v113_v55 = vpop.permute.xlu0 %112 }
 0x1bb   :  { %v129_v59 = vmul.f32 %v113_v55, %v57_v54 }
 0x1bd   :  { %v134_v2 = vsel %vm133_vm5, %v129_v59, 0.0 }
 0x1be   :  { %v407_v21 = vpop.permute.xlu0 %406 }
 0x1bf   :  { %v118_v56 = vpop.permute.xlu1 %117  ;;  %v409_v26 = vunpack.i.h.bf16 %v407_v21  ;;  %v408_v27 = vunpack.i.l.bf16 %v407_v21 }
 0x1c0   :  { %v130_v57 = vmul.f32 %v118_v56, %v58_v53 }
 0x1c2   :  { %v135_v61 = vsel %vm133_vm5, %v130_v57, 0.0  ;;  %v417_v29 = vpop.permute.xlu0 %416 }
 0x1c3   :  { %v123_v60 = vpop.permute.xlu1 %122  ;;  %v136_v4 = vadd.f32 %v135_v61, %v134_v2  ;;  %v419_v34 = vunpack.i.h.bf16 %v417_v29  ;;  %v418_v35 = vunpack.i.l.bf16 %v417_v29 }
 0x1c4   :  { %v131_v62 = vmul.f32 %v123_v60, %v59_v58 }
 0x1c6   :  { %v137_v3 = vsel %vm133_vm5, %v131_v62, 0.0 }
 0x1c7   :  { %v127_v5 = vpop.permute.xlu1 %126  ;;  %v138_v7 = vadd.f32 %v137_v3, %v136_v4 }
 0x1c8   :  { %v132_v6 = vmul.f32 %v127_v5, %v60_v63 }
 0x1ca   :  { %v140_v8 = vsel %vm139_vm6, %v132_v6, 0.0 }
 0x1cb   :  { %v141_v9 = vadd.f32 %v140_v8, %v138_v7  ;;  %v91_v10 = vpop.permute.xlu1 %90 }
 0x1cc   :  { %v107_v11 = vmul.f32 %v91_v10, %v57_v54 }
 0x1cd   :  { %v142_v12 = vrot.slane %v141_v9, 4 }
 0x1ce   :  { %200 = vxpose.xlu1.b32.start [1/4] (short) (narrow) %v107_v11, 24 }
 0x1cf   :  { %v143_v13 = vadd.f32 %v142_v12, %v141_v9  ;;  %v96_v14 = vpop.permute.xlu1 %95 }
 0x1d0   :  { %v108_v15 = vmul.f32 %v96_v14, %v58_v53 }
 0x1d1   :  { %v144_v16 = vrot.slane %v143_v13, 2 }
 0x1d2   :  { %201 = vxpose.xlu1.b32.cont [2/4] (short) (narrow) %v108_v15, 24 }
 0x1d3   :  { %v145_v17 = vadd.f32 %v144_v16, %v143_v13  ;;  %v101_v18 = vpop.permute.xlu1 %100 }
 0x1d4   :  { %v109_v19 = vmul.f32 %v101_v18, %v59_v58 }
 0x1d5   :  { %v146_v20 = vrot.slane %v145_v17, 1 }
 0x1d6   :  { %202 = vxpose.xlu1.b32.cont [3/4] (short) (narrow) %v109_v19, 24 }
 0x1d7   :  { %v105_v22 = vpop.permute.xlu1 %104  ;;  %v147_v23 = vadd.f32 %v146_v20, %v145_v17 }
 0x1d8   :  { %v110_v24 = vmul.f32 %v105_v22, %v60_v63 }
 0x1da   :  { %v199_v25 = vsel %vm197_vm7, %v110_v24, %v147_v23 }
 0x1db   :  { %203 = vxpose.xlu1.b32.end [4/4] (short) (narrow) %v199_v25, 24  ;;  %v402_v28 = vpop.permute.xlu1 %401 }
 0x1dc   :  { %v404_v30 = vunpack.i.h.bf16 %v402_v28  ;;  %v403_v31 = vunpack.i.l.bf16 %v402_v28 }
 0x1de   :  { %v172_v32 = vsel %vm156_vm8, %v404_v30, %v409_v26  ;;  %v171_v33 = vsel %vm156_vm8, %v403_v31, %v408_v27 }
 0x1df   :  { %v184_v36 = vrot.slane %v172_v32, 6  ;;  %v183_v37 = vrot.slane %v171_v33, 6  ;;  %v412_v38 = vpop.permute.xlu1 %411 }
 0x1e0   :  { %v414_v39 = vunpack.i.h.bf16 %v412_v38  ;;  %v413_v40 = vunpack.i.l.bf16 %v412_v38 }
 0x1e1   :  { %v185_v41 = vsel %vm63_vm2, %v183_v37, %v184_v36 }
 0x1e2   :  { %v180_v42 = vsel %vm156_vm8, %v413_v40, %v419_v34  ;;  %v179_v43 = vsel %vm156_vm8, %v414_v39, %v418_v35  ;;  %v157_v44 = vsel %vm156_vm8, %v488_v0, %v414_v39  ;;  %v158_v45 = vsel %vm156_vm8, %v493_v1, %v413_v40 }
 0x1e3   :  { %v191_v46 = vrot.slane %v180_v42, 4  ;;  %v190_v47 = vrot.slane %v179_v43, 4  ;;  %v195_v48 = vsel %vm63_vm2, %v158_v45, %v183_v37 }
 0x1e4   :  { %v376_v49 = vpack.c.bf16 %v195_v48, %v157_v44 }
 0x1e5   :  { %v192_v50 = vsel %vm69_vm3, %v190_v47, %v191_v46  ;;  %v196_v53 = vsel %vm69_vm3, %v185_v41, %v190_v47 }
 0x1e6   :  { %377 = vmatpush3.bf16.msra.mxu0 %v376_v49  ;;  %384 = vmatpush3.bf16.msra.mxu1 %v376_v49  ;;  %v198_v54 = vsel %vm197_vm7, %v192_v50, 1.0 }
 0x1e7   :  { %378 = vmatprep.subr.bf16.mxu0 %v453_v51  ;;  %383 = vmatprep.subr.bf16.mxu1 %v453_v51  ;;  %v379_v0 = vpack.c.bf16 %v198_v54, %v196_v53 }
 0x1ea   :  { %381 = vmatpush3.bf16.msk.msra.mxu0 %vm380_vm11, %v379_v0  ;;  %385 = vmatpush3.bf16.msk.msra.mxu1 %vm380_vm11, %v379_v0 }
 0x24f   :  { %v216_v1 = vpop.trf.xlu1 }
 0x250   :  { %367 = vmatmul.mubr.msk.f32.vlgmr.msra.gmra.mrb[0].mxu0 %vm232_vm12, %v216_v1 }
 0x253   :  { %v217_v55 = vpop.trf.xlu1 }
 0x254   :  { %370 = vmatmul.mubr.msk.f32.vlgmr.msra.gmra.mrb[0].mxu1 %vm232_vm12, %v217_v55 }
 0x255   :  { %372 = vmatprep.mubr.msk.f32.mxu1 %vm454_vm4, %v455_v52 }
 0x257   :  { %v218_v56 = vpop.trf.xlu1 }
 0x258   :  { %373 = vmatmul.mubr.msk.f32.gmra.mrb[2].mxu1 %vm232_vm12, %v218_v56 }
 0x323   :  { %v312_v57 = vpop.f32.mrb[0].mxu0 }
 0x324   :  { %327 = vst.msk [vmem:[#allocation2] sm:$0xff] %vm326_vm13, %v312_v57  ;;  %v368_v58 = vpop.f32.mrb[1].mxu0 }
 0x327   :  { %v317_v51 = vpop.f32.mrb[0].mxu1 }
 0x328   :  { %328 = vst.msk [vmem:[#allocation2 + $0x8] sm:$0xff] %vm326_vm13, %v317_v51  ;;  %v371_v59 = vpop.f32.mrb[1].mxu1 }
 0x32b   :  { %v322_v60 = vpop.f32.mrb[2].mxu1 }
 0x32c   :  { %330 = vst.msk [vmem:[#allocation2 + $0x10] sm:$0xf] %vm329_vm14, %v322_v60  ;;  %v374_v61 = vpop.f32.mrb[3].mxu1 }
 0x32d   :  { %435 = shalt.err (!%p432_p4)
}
 0x32e   :  { %s436_s14 = scalar_lea.hbm %s577_s4, 384 }
 0x32f   :  { %p437_p5 = scmp.ne.s32.totalorder %s577_s4, %s436_s14  ;;  %p440_p6 = scmp.lt.u32.totalorder %s436_s14, %s577_s4 }
 0x331   :  { %p442_p7 = pnand %p440_p6, %p437_p5 }
 0x333   :  { %445 = shalt.err (!%p442_p7)
}
 0x334   :  { %s458_s0 = smov 128   ;;  %s459_s19 = smov 8  }
 0x335   :  { %342 = dma.vmem_to_hbm [thread:$0]  %s337_s10, 384, %s577_s4, [#allocation3], %s458_s0, %s458_s0, %s459_s19  }
 0x336   :  { %446 = dma.done.wait [#allocation3], 384  }
 0x337   :  { %447 = vsyncadd [#allocation3], 4294966912 }
 0x338   :  { %346 = vsyncpa [#allocation3], 1 }

</bundles_post_ra>
